<compile_context>
chip_gen: v5e
topology: v5e:2x2
jax: 0.10.0
libtpu: 0.0.40
codegen_flags: <defaults>
</compile_context>

<pallas_src>
import jax
import jax.numpy as jnp
from jax import lax
from jax.experimental import pallas as pl
from jax.experimental.pallas import tpu as pltpu


def _round_up(x, m):
    return (x + m - 1) // m * m


def _sigmoid(x):
    # logistic via a single EUP tanh: sigmoid(x) = 0.5 * (tanh(x/2) + 1)
    return 0.5 * jnp.tanh(0.5 * x) + 0.5


def lstm_head_kernel(len_ref, gx_ref, whh_ref, wout_ref, bout_ref,
                     out_ref, h_scr, c_scr):
    """One (batch_tile, time_tile) grid step of the LSTM recurrence + head.

    len_ref : (Bt, 1) int32        valid sequence lengths
    gx_ref  : (Tt, Bt, 4*Hp) f32   precomputed x_t @ W_ih + b (gate order i,f,g,o, lane-aligned)
    whh_ref : (Hp, 4*Hp) bf16      recurrent weights (VMEM resident)
    wout_ref: (Hp, Cp) bf16        output head weights
    bout_ref: (1, Cp) f32          head bias (-1e30 in padded class columns)
    out_ref : (Bt, Cp) f32         log-probabilities
    h_scr/c_scr : (Bt, Hp) f32     VMEM scratch carried across the time grid axis
    """
    t_tile = pl.program_id(1)
    Tt = gx_ref.shape[0]
    Hp = h_scr.shape[1]

    @pl.when(t_tile == 0)
    def _init():
        h_scr[...] = jnp.zeros_like(h_scr)
        c_scr[...] = jnp.zeros_like(c_scr)

    lens = len_ref[...]                       # (Bt, 1) int32, loaded once per tile
    w_hh = whh_ref[...]                       # loop-invariant; hoisted out of the time loop
    t0 = t_tile * Tt

    def step(lt, carry):
        t = t0 + lt
        # only the serial part of the gate computation happens here
        gates = gx_ref[lt] + jnp.dot(h_scr[...].astype(jnp.bfloat16), w_hh,
                                     preferred_element_type=jnp.float32)   # (Bt, 4Hp)
        i_g = _sigmoid(gates[:, 0 * Hp:1 * Hp])
        f_g = _sigmoid(gates[:, 1 * Hp:2 * Hp])
        g_g = jnp.tanh(gates[:, 2 * Hp:3 * Hp])
        o_g = _sigmoid(gates[:, 3 * Hp:4 * Hp])
        c_new = f_g * c_scr[...] + i_g * g_g
        h_new = o_g * jnp.tanh(c_new)
        # pack_padded_sequence semantics: freeze state once t >= lengths[b]
        live = jnp.broadcast_to(t < lens, h_new.shape)
        h_scr[...] = jnp.where(live, h_new, h_scr[...])
        c_scr[...] = jnp.where(live, c_new, c_scr[...])
        return carry

    lax.fori_loop(0, Tt, step, 0, unroll=True)

    @pl.when(t_tile == pl.num_programs(1) - 1)
    def _finalize():
        # output Linear + log_softmax on the final hidden state (== hn[-1])
        logits = (jnp.dot(h_scr[...].astype(jnp.bfloat16), wout_ref[...],
                          preferred_element_type=jnp.float32) + bout_ref[...])
        mx = jnp.max(logits, axis=-1, keepdims=True)
        lse = jnp.log(jnp.sum(jnp.exp(logits - mx), axis=-1, keepdims=True)) + mx
        out_ref[...] = logits - lse


def init_params(key, vocab_size, embedding_dim, hidden_dim, num_class):
    """Deterministic parameter init mirroring PyTorch default shapes."""
    ks = jax.random.split(key, 7)
    E, H, C = embedding_dim, hidden_dim, num_class
    bound = 1.0 / jnp.sqrt(jnp.float32(H))
    emb = jax.random.normal(ks[0], (vocab_size, E), jnp.float32)          # nn.Embedding ~ N(0,1)
    w_ih = jax.random.uniform(ks[1], (E, 4 * H), jnp.float32, -bound, bound)
    w_hh = jax.random.uniform(ks[2], (H, 4 * H), jnp.float32, -bound, bound)
    b_ih = jax.random.uniform(ks[3], (4 * H,), jnp.float32, -bound, bound)
    b_hh = jax.random.uniform(ks[4], (4 * H,), jnp.float32, -bound, bound)
    b = (b_ih + b_hh).reshape(1, 4 * H)
    w_out = jax.random.uniform(ks[5], (H, C), jnp.float32, -bound, bound)
    b_out = jax.random.uniform(ks[6], (1, C), jnp.float32, -bound, bound)
    return dict(emb=emb, w_ih=w_ih, w_hh=w_hh, b=b, w_out=w_out, b_out=b_out)


def lstm_forward(params, token_ids, lengths, *, time_tile=16):
    """token_ids: (B, T) int32, lengths: (B,) int32 -> log_probs (B, num_class)."""
    B, T = token_ids.shape
    E = params["emb"].shape[1]
    H = params["w_hh"].shape[0]
    C = params["w_out"].shape[1]

    Hp = _round_up(H, 128)                 # lane-aligned gate width
    Cp = _round_up(C, 128)                 # lane-dense output
    Bt = min(_round_up(B, 8), 128)         # sublane-aligned batch tile
    Bp = _round_up(B, Bt)
    Tt = max(1, min(time_tile, T))         # time tile (grid-pipelined)
    Tp = _round_up(T, Tt)

    # --- gate-lane-aligned weight packing: pad H -> Hp inside each of the 4 gates ---
    def pad_gate_cols(w, rows_to):
        rows = w.shape[0]
        w4 = w.reshape(rows, 4, H)
        w4 = jnp.pad(w4, ((0, rows_to - rows), (0, 0), (0, Hp - H)))
        return w4.reshape(rows_to, 4 * Hp)

    w_ih_p = pad_gate_cols(params["w_ih"], E)          # (E, 4Hp)
    w_hh_p = pad_gate_cols(params["w_hh"], Hp)         # (Hp, 4Hp)
    b_p = pad_gate_cols(params["b"], 1)                # (1, 4Hp)
    w_out_p = jnp.pad(params["w_out"], ((0, Hp - H), (0, Cp - C)))     # (Hp, Cp)
    class_mask = jnp.arange(Cp) < C
    b_out_p = jnp.where(class_mask[None, :],
                        jnp.pad(params["b_out"], ((0, 0), (0, Cp - C))),
                        -1e30)                                         # (1, Cp)

    # --- embedding gather + hoisted time-parallel input projection (one big matmul) ---
    x = jnp.take(params["emb"], token_ids, axis=0)     # (B, T, E)
    x = jnp.transpose(x, (1, 0, 2))                    # (T, B, E) time-major
    gx = (jnp.dot(x.reshape(T * B, E).astype(jnp.bfloat16),
                  w_ih_p.astype(jnp.bfloat16),
                  preferred_element_type=jnp.float32).reshape(T, B, 4 * Hp) + b_p)
    gx = jnp.pad(gx, ((0, Tp - T), (0, Bp - B), (0, 0)))   # padded steps/rows are masked in-kernel
    lens_p = jnp.pad(lengths.astype(jnp.int32), (0, Bp - B)).reshape(Bp, 1)

    grid = (Bp // Bt, Tp // Tt)
    out_padded = pl.pallas_call(
        lstm_head_kernel,
        out_shape=jax.ShapeDtypeStruct((Bp, Cp), jnp.float32),
        grid_spec=pltpu.PrefetchScalarGridSpec(
            num_scalar_prefetch=0,
            grid=grid,
            in_specs=[
                pl.BlockSpec((Bt, 1), lambda i, t: (i, 0)),               # lengths
                pl.BlockSpec((Tt, Bt, 4 * Hp), lambda i, t: (t, i, 0)),   # streamed gate inputs
                pl.BlockSpec((Hp, 4 * Hp), lambda i, t: (0, 0)),          # W_hh (resident, bf16)
                pl.BlockSpec((Hp, Cp), lambda i, t: (0, 0)),              # W_out (resident, bf16)
                pl.BlockSpec((1, Cp), lambda i, t: (0, 0)),               # b_out
            ],
            out_specs=pl.BlockSpec((Bt, Cp), lambda i, t: (i, 0)),
            scratch_shapes=[pltpu.VMEM((Bt, Hp), jnp.float32),   # h carry
                            pltpu.VMEM((Bt, Hp), jnp.float32)],  # c carry
        ),
        compiler_params=pltpu.CompilerParams(
            dimension_semantics=("parallel", "arbitrary"),
            vmem_limit_bytes=64 * 1024 * 1024,
        ),
    )(lens_p, gx, w_hh_p.astype(jnp.bfloat16),
      w_out_p.astype(jnp.bfloat16), b_out_p)
    return out_padded[:B, :C]


def lstm_forward_ref(params, token_ids, lengths):
    """Pure-JAX reference with the same math/precision (bf16 matmuls, f32 accum/gates)."""
    B, T = token_ids.shape
    E = params["emb"].shape[1]
    H = params["w_hh"].shape[0]
    bf = jnp.bfloat16
    x = jnp.take(params["emb"], token_ids, axis=0)       # (B, T, E)
    gx = (jnp.dot(x.reshape(B * T, E).astype(bf), params["w_ih"].astype(bf),
                  preferred_element_type=jnp.float32).reshape(B, T, 4 * H)
          + params["b"])
    h = jnp.zeros((B, H), jnp.float32)
    c = jnp.zeros((B, H), jnp.float32)
    for t in range(T):
        gates = gx[:, t, :] + jnp.dot(h.astype(bf), params["w_hh"].astype(bf),
                                      preferred_element_type=jnp.float32)
        i_g = _sigmoid(gates[:, 0 * H:1 * H])
        f_g = _sigmoid(gates[:, 1 * H:2 * H])
        g_g = jnp.tanh(gates[:, 2 * H:3 * H])
        o_g = _sigmoid(gates[:, 3 * H:4 * H])
        c_new = f_g * c + i_g * g_g
        h_new = o_g * jnp.tanh(c_new)
        m = (t < lengths)[:, None]
        h = jnp.where(m, h_new, h)
        c = jnp.where(m, c_new, c)
    logits = (jnp.dot(h.astype(bf), params["w_out"].astype(bf),
                      preferred_element_type=jnp.float32) + params["b_out"])
    return jax.nn.log_softmax(logits, axis=-1)


if __name__ == "__main__":
    # Small deterministic example: vocab=50, B=2, T=8, E=32, H=32, num_class=4.
    key = jax.random.PRNGKey(0)
    k_param, k_tok = jax.random.split(key)

    vocab_size, embedding_dim, hidden_dim, num_class = 50, 32, 32, 4
    B, T = 2, 8

    params = init_params(k_param, vocab_size, embedding_dim, hidden_dim, num_class)
    token_ids = jax.random.randint(k_tok, (B, T), 0, vocab_size, dtype=jnp.int32)
    lengths = jnp.array([8, 5], dtype=jnp.int32)   # variable-length (packed) sequences

    # time_tile=4 -> 2 time tiles, exercising the carried-scratch / pl.when init+finalize path.
    log_probs = lstm_forward(params, token_ids, lengths, time_tile=4)
    log_probs = jax.block_until_ready(log_probs)

    ref = lstm_forward_ref(params, token_ids, lengths)
    assert log_probs.shape == (B, num_class)
    assert jnp.allclose(log_probs, ref, atol=1e-3, rtol=1e-3), (
        "mismatch vs reference, max abs diff = "
        f"{float(jnp.max(jnp.abs(log_probs - ref)))}")

    print("KERNEL_OK")
</pallas_src>

<mosaic_0001>
module attributes {stable_mosaic.version = 11 : i64} {
  func.func @lstm_head_kernel(%arg0: i32, %arg1: i32, %arg2: memref<8x1xi32, #tpu.memory_space<vmem>>, %arg3: memref<4x8x512xf32, #tpu.memory_space<vmem>>, %arg4: memref<128x512xbf16, #tpu.memory_space<vmem>>, %arg5: memref<128x128xbf16, #tpu.memory_space<vmem>>, %arg6: memref<1x128xf32, #tpu.memory_space<vmem>>, %arg7: memref<8x128xf32, #tpu.memory_space<vmem>>, %arg8: memref<8x128xf32, #tpu.memory_space<vmem>>, %arg9: memref<8x128xf32, #tpu.memory_space<vmem>>) attributes {dimension_semantics = [#tpu.dimension_semantics<parallel>, #tpu.dimension_semantics<arbitrary>], iteration_bounds = array<i64: 1, 2>, scalar_prefetch = 0 : i64, scratch_operands = 2 : i64, tpu.core_type = #tpu.core_type<tc>, window_params = [{transform_indices = @transform_0, window_bounds = array<i64: 8, 1>}, {transform_indices = @transform_1, window_bounds = array<i64: 4, 8, 512>}, {pipeline_mode = #tpu.pipeline_mode<synchronous>, transform_indices = @transform_2, window_bounds = array<i64: 128, 512>}, {pipeline_mode = #tpu.pipeline_mode<synchronous>, transform_indices = @transform_3, window_bounds = array<i64: 128, 128>}, {pipeline_mode = #tpu.pipeline_mode<synchronous>, transform_indices = @transform_4, window_bounds = array<i64: 1, 128>}, {transform_indices = @transform_5, window_bounds = array<i64: 8, 128>}]} {
    %c0_i32 = arith.constant 0 : i32
    %0 = arith.cmpi eq, %arg1, %c0_i32 : i32
    %1 = arith.extui %0 : i1 to i32
    %c0_i32_0 = arith.constant 0 : i32
    %2 = arith.cmpi ne, %1, %c0_i32_0 : i32
    scf.if %2 {
      %cst_103 = arith.constant 0.000000e+00 : f32
      %209 = vector.broadcast %cst_103 : f32 to vector<8x128xf32>
      %c0_104 = arith.constant 0 : index
      %c0_105 = arith.constant 0 : index
      %210 = vector.load %arg8[%c0_104, %c0_105] : memref<8x128xf32, #tpu.memory_space<vmem>>, vector<8x128xf32>
      tpu.vector_store %arg8[%c0_104, %c0_105], %209 {strides = array<i32>} : memref<8x128xf32, #tpu.memory_space<vmem>>, vector<8x128xf32>,
      %cst_106 = arith.constant 0.000000e+00 : f32
      %211 = vector.broadcast %cst_106 : f32 to vector<8x128xf32>
      %c0_107 = arith.constant 0 : index
      %c0_108 = arith.constant 0 : index
      %212 = vector.load %arg9[%c0_107, %c0_108] : memref<8x128xf32, #tpu.memory_space<vmem>>, vector<8x128xf32>
      tpu.vector_store %arg9[%c0_107, %c0_108], %211 {strides = array<i32>} : memref<8x128xf32, #tpu.memory_space<vmem>>, vector<8x128xf32>,
    } else {
    }
    %c0 = arith.constant 0 : index
    %c0_1 = arith.constant 0 : index
    %3 = vector.load %arg2[%c0, %c0_1] : memref<8x1xi32, #tpu.memory_space<vmem>>, vector<8x1xi32>
    %c0_2 = arith.constant 0 : index
    %c0_3 = arith.constant 0 : index
    %4 = vector.load %arg4[%c0_2, %c0_3] : memref<128x512xbf16, #tpu.memory_space<vmem>>, vector<128x512xbf16>
    %c4_i32 = arith.constant 4 : i32
    %5 = arith.muli %arg1, %c4_i32 : i32
    %c0_i32_4 = arith.constant 0 : i32
    %6 = arith.addi %5, %c0_i32_4 : i32
    %7 = arith.index_cast %c0_i32_4 : i32 to index
    %c0_5 = arith.constant 0 : index
    %c0_6 = arith.constant 0 : index
    %8 = vector.load %arg3[%7, %c0_5, %c0_6] : memref<4x8x512xf32, #tpu.memory_space<vmem>>, vector<1x8x512xf32>
    %9 = vector.shape_cast %8 : vector<1x8x512xf32> to vector<8x512xf32>
    %c0_7 = arith.constant 0 : index
    %c0_8 = arith.constant 0 : index
    %10 = vector.load %arg8[%c0_7, %c0_8] : memref<8x128xf32, #tpu.memory_space<vmem>>, vector<8x128xf32>
    %11 = arith.truncf %10 : vector<8x128xf32> to vector<8x128xbf16>
    %cst = arith.constant dense<0.000000e+00> : vector<8x512xf32>
    %12 = tpu.matmul %11, %4, %cst {dimension_numbers = #tpu.dot_dimension_numbers<[1], [0], [0], [1], [0, 0, 1, 1], [], []>} : vector<8x128xbf16>, vector<128x512xbf16>, vector<8x512xf32> -> vector<8x512xf32>
    %13 = arith.addf %9, %12 : vector<8x512xf32>
    %14 = vector.extract_strided_slice %13 {offsets = [0, 0], sizes = [8, 128], strides = [1, 1]} : vector<8x512xf32> to vector<8x128xf32>
    %cst_9 = arith.constant 5.000000e-01 : f32
    %15 = vector.broadcast %cst_9 : f32 to vector<8x128xf32>
    %16 = arith.mulf %15, %14 : vector<8x128xf32>
    %17 = math.tanh %16 : vector<8x128xf32>
    %cst_10 = arith.constant 5.000000e-01 : f32
    %18 = vector.broadcast %cst_10 : f32 to vector<8x128xf32>
    %19 = arith.mulf %18, %17 : vector<8x128xf32>
    %cst_11 = arith.constant 5.000000e-01 : f32
    %20 = vector.broadcast %cst_11 : f32 to vector<8x128xf32>
    %21 = arith.addf %19, %20 : vector<8x128xf32>
    %22 = vector.extract_strided_slice %13 {offsets = [0, 128], sizes = [8, 128], strides = [1, 1]} : vector<8x512xf32> to vector<8x128xf32>
    %cst_12 = arith.constant 5.000000e-01 : f32
    %23 = vector.broadcast %cst_12 : f32 to vector<8x128xf32>
    %24 = arith.mulf %23, %22 : vector<8x128xf32>
    %25 = math.tanh %24 : vector<8x128xf32>
    %cst_13 = arith.constant 5.000000e-01 : f32
    %26 = vector.broadcast %cst_13 : f32 to vector<8x128xf32>
    %27 = arith.mulf %26, %25 : vector<8x128xf32>
    %cst_14 = arith.constant 5.000000e-01 : f32
    %28 = vector.broadcast %cst_14 : f32 to vector<8x128xf32>
    %29 = arith.addf %27, %28 : vector<8x128xf32>
    %30 = vector.extract_strided_slice %13 {offsets = [0, 256], sizes = [8, 128], strides = [1, 1]} : vector<8x512xf32> to vector<8x128xf32>
    %31 = math.tanh %30 : vector<8x128xf32>
    %32 = vector.extract_strided_slice %13 {offsets = [0, 384], sizes = [8, 128], strides = [1, 1]} : vector<8x512xf32> to vector<8x128xf32>
    %cst_15 = arith.constant 5.000000e-01 : f32
    %33 = vector.broadcast %cst_15 : f32 to vector<8x128xf32>
    %34 = arith.mulf %33, %32 : vector<8x128xf32>
    %35 = math.tanh %34 : vector<8x128xf32>
    %cst_16 = arith.constant 5.000000e-01 : f32
    %36 = vector.broadcast %cst_16 : f32 to vector<8x128xf32>
    %37 = arith.mulf %36, %35 : vector<8x128xf32>
    %cst_17 = arith.constant 5.000000e-01 : f32
    %38 = vector.broadcast %cst_17 : f32 to vector<8x128xf32>
    %39 = arith.addf %37, %38 : vector<8x128xf32>
    %c0_18 = arith.constant 0 : index
    %c0_19 = arith.constant 0 : index
    %40 = vector.load %arg9[%c0_18, %c0_19] : memref<8x128xf32, #tpu.memory_space<vmem>>, vector<8x128xf32>
    %41 = arith.mulf %29, %40 : vector<8x128xf32>
    %42 = arith.mulf %21, %31 : vector<8x128xf32>
    %43 = arith.addf %41, %42 : vector<8x128xf32>
    %44 = math.tanh %43 : vector<8x128xf32>
    %45 = arith.mulf %39, %44 : vector<8x128xf32>
    %46 = vector.broadcast %6 : i32 to vector<8x1xi32>
    %47 = arith.cmpi slt, %46, %3 : vector<8x1xi32>
    %48 = vector.shape_cast %47 : vector<8x1xi1> to vector<8x1xi1>
    %49 = vector.broadcast %48 : vector<8x1xi1> to vector<8x128xi1>
    %c0_20 = arith.constant 0 : index
    %c0_21 = arith.constant 0 : index
    %50 = vector.load %arg8[%c0_20, %c0_21] : memref<8x128xf32, #tpu.memory_space<vmem>>, vector<8x128xf32>
    %51 = arith.select %49, %45, %50 : vector<8x128xi1>, vector<8x128xf32>
    %c0_22 = arith.constant 0 : index
    %c0_23 = arith.constant 0 : index
    %52 = vector.load %arg8[%c0_22, %c0_23] : memref<8x128xf32, #tpu.memory_space<vmem>>, vector<8x128xf32>
    tpu.vector_store %arg8[%c0_22, %c0_23], %51 {strides = array<i32>} : memref<8x128xf32, #tpu.memory_space<vmem>>, vector<8x128xf32>,
    %c0_24 = arith.constant 0 : index
    %c0_25 = arith.constant 0 : index
    %53 = vector.load %arg9[%c0_24, %c0_25] : memref<8x128xf32, #tpu.memory_space<vmem>>, vector<8x128xf32>
    %54 = arith.select %49, %43, %53 : vector<8x128xi1>, vector<8x128xf32>
    %c0_26 = arith.constant 0 : index
    %c0_27 = arith.constant 0 : index
    %55 = vector.load %arg9[%c0_26, %c0_27] : memref<8x128xf32, #tpu.memory_space<vmem>>, vector<8x128xf32>
    tpu.vector_store %arg9[%c0_26, %c0_27], %54 {strides = array<i32>} : memref<8x128xf32, #tpu.memory_space<vmem>>, vector<8x128xf32>,
    %c1_i32 = arith.constant 1 : i32
    %56 = arith.addi %5, %c1_i32 : i32
    %57 = arith.index_cast %c1_i32 : i32 to index
    %c0_28 = arith.constant 0 : index
    %c0_29 = arith.constant 0 : index
    %58 = vector.load %arg3[%57, %c0_28, %c0_29] : memref<4x8x512xf32, #tpu.memory_space<vmem>>, vector<1x8x512xf32>
    %59 = vector.shape_cast %58 : vector<1x8x512xf32> to vector<8x512xf32>
    %c0_30 = arith.constant 0 : index
    %c0_31 = arith.constant 0 : index
    %60 = vector.load %arg8[%c0_30, %c0_31] : memref<8x128xf32, #tpu.memory_space<vmem>>, vector<8x128xf32>
    %61 = arith.truncf %60 : vector<8x128xf32> to vector<8x128xbf16>
    %cst_32 = arith.constant dense<0.000000e+00> : vector<8x512xf32>
    %62 = tpu.matmul %61, %4, %cst_32 {dimension_numbers = #tpu.dot_dimension_numbers<[1], [0], [0], [1], [0, 0, 1, 1], [], []>} : vector<8x128xbf16>, vector<128x512xbf16>, vector<8x512xf32> -> vector<8x512xf32>
    %63 = arith.addf %59, %62 : vector<8x512xf32>
    %64 = vector.extract_strided_slice %63 {offsets = [0, 0], sizes = [8, 128], strides = [1, 1]} : vector<8x512xf32> to vector<8x128xf32>
    %cst_33 = arith.constant 5.000000e-01 : f32
    %65 = vector.broadcast %cst_33 : f32 to vector<8x128xf32>
    %66 = arith.mulf %65, %64 : vector<8x128xf32>
    %67 = math.tanh %66 : vector<8x128xf32>
    %cst_34 = arith.constant 5.000000e-01 : f32
    %68 = vector.broadcast %cst_34 : f32 to vector<8x128xf32>
    %69 = arith.mulf %68, %67 : vector<8x128xf32>
    %cst_35 = arith.constant 5.000000e-01 : f32
    %70 = vector.broadcast %cst_35 : f32 to vector<8x128xf32>
    %71 = arith.addf %69, %70 : vector<8x128xf32>
    %72 = vector.extract_strided_slice %63 {offsets = [0, 128], sizes = [8, 128], strides = [1, 1]} : vector<8x512xf32> to vector<8x128xf32>
    %cst_36 = arith.constant 5.000000e-01 : f32
    %73 = vector.broadcast %cst_36 : f32 to vector<8x128xf32>
    %74 = arith.mulf %73, %72 : vector<8x128xf32>
    %75 = math.tanh %74 : vector<8x128xf32>
    %cst_37 = arith.constant 5.000000e-01 : f32
    %76 = vector.broadcast %cst_37 : f32 to vector<8x128xf32>
    %77 = arith.mulf %76, %75 : vector<8x128xf32>
    %cst_38 = arith.constant 5.000000e-01 : f32
    %78 = vector.broadcast %cst_38 : f32 to vector<8x128xf32>
    %79 = arith.addf %77, %78 : vector<8x128xf32>
    %80 = vector.extract_strided_slice %63 {offsets = [0, 256], sizes = [8, 128], strides = [1, 1]} : vector<8x512xf32> to vector<8x128xf32>
    %81 = math.tanh %80 : vector<8x128xf32>
    %82 = vector.extract_strided_slice %63 {offsets = [0, 384], sizes = [8, 128], strides = [1, 1]} : vector<8x512xf32> to vector<8x128xf32>
    %cst_39 = arith.constant 5.000000e-01 : f32
    %83 = vector.broadcast %cst_39 : f32 to vector<8x128xf32>
    %84 = arith.mulf %83, %82 : vector<8x128xf32>
    %85 = math.tanh %84 : vector<8x128xf32>
    %cst_40 = arith.constant 5.000000e-01 : f32
    %86 = vector.broadcast %cst_40 : f32 to vector<8x128xf32>
    %87 = arith.mulf %86, %85 : vector<8x128xf32>
    %cst_41 = arith.constant 5.000000e-01 : f32
    %88 = vector.broadcast %cst_41 : f32 to vector<8x128xf32>
    %89 = arith.addf %87, %88 : vector<8x128xf32>
    %c0_42 = arith.constant 0 : index
    %c0_43 = arith.constant 0 : index
    %90 = vector.load %arg9[%c0_42, %c0_43] : memref<8x128xf32, #tpu.memory_space<vmem>>, vector<8x128xf32>
    %91 = arith.mulf %79, %90 : vector<8x128xf32>
    %92 = arith.mulf %71, %81 : vector<8x128xf32>
    %93 = arith.addf %91, %92 : vector<8x128xf32>
    %94 = math.tanh %93 : vector<8x128xf32>
    %95 = arith.mulf %89, %94 : vector<8x128xf32>
    %96 = vector.broadcast %56 : i32 to vector<8x1xi32>
    %97 = arith.cmpi slt, %96, %3 : vector<8x1xi32>
    %98 = vector.shape_cast %97 : vector<8x1xi1> to vector<8x1xi1>
    %99 = vector.broadcast %98 : vector<8x1xi1> to vector<8x128xi1>
    %c0_44 = arith.constant 0 : index
    %c0_45 = arith.constant 0 : index
    %100 = vector.load %arg8[%c0_44, %c0_45] : memref<8x128xf32, #tpu.memory_space<vmem>>, vector<8x128xf32>
    %101 = arith.select %99, %95, %100 : vector<8x128xi1>, vector<8x128xf32>
    %c0_46 = arith.constant 0 : index
    %c0_47 = arith.constant 0 : index
    %102 = vector.load %arg8[%c0_46, %c0_47] : memref<8x128xf32, #tpu.memory_space<vmem>>, vector<8x128xf32>
    tpu.vector_store %arg8[%c0_46, %c0_47], %101 {strides = array<i32>} : memref<8x128xf32, #tpu.memory_space<vmem>>, vector<8x128xf32>,
    %c0_48 = arith.constant 0 : index
    %c0_49 = arith.constant 0 : index
    %103 = vector.load %arg9[%c0_48, %c0_49] : memref<8x128xf32, #tpu.memory_space<vmem>>, vector<8x128xf32>
    %104 = arith.select %99, %93, %103 : vector<8x128xi1>, vector<8x128xf32>
    %c0_50 = arith.constant 0 : index
    %c0_51 = arith.constant 0 : index
    %105 = vector.load %arg9[%c0_50, %c0_51] : memref<8x128xf32, #tpu.memory_space<vmem>>, vector<8x128xf32>
    tpu.vector_store %arg9[%c0_50, %c0_51], %104 {strides = array<i32>} : memref<8x128xf32, #tpu.memory_space<vmem>>, vector<8x128xf32>,
    %c2_i32 = arith.constant 2 : i32
    %106 = arith.addi %5, %c2_i32 : i32
    %107 = arith.index_cast %c2_i32 : i32 to index
    %c0_52 = arith.constant 0 : index
    %c0_53 = arith.constant 0 : index
    %108 = vector.load %arg3[%107, %c0_52, %c0_53] : memref<4x8x512xf32, #tpu.memory_space<vmem>>, vector<1x8x512xf32>
    %109 = vector.shape_cast %108 : vector<1x8x512xf32> to vector<8x512xf32>
    %c0_54 = arith.constant 0 : index
    %c0_55 = arith.constant 0 : index
    %110 = vector.load %arg8[%c0_54, %c0_55] : memref<8x128xf32, #tpu.memory_space<vmem>>, vector<8x128xf32>
    %111 = arith.truncf %110 : vector<8x128xf32> to vector<8x128xbf16>
    %cst_56 = arith.constant dense<0.000000e+00> : vector<8x512xf32>
    %112 = tpu.matmul %111, %4, %cst_56 {dimension_numbers = #tpu.dot_dimension_numbers<[1], [0], [0], [1], [0, 0, 1, 1], [], []>} : vector<8x128xbf16>, vector<128x512xbf16>, vector<8x512xf32> -> vector<8x512xf32>
    %113 = arith.addf %109, %112 : vector<8x512xf32>
    %114 = vector.extract_strided_slice %113 {offsets = [0, 0], sizes = [8, 128], strides = [1, 1]} : vector<8x512xf32> to vector<8x128xf32>
    %cst_57 = arith.constant 5.000000e-01 : f32
    %115 = vector.broadcast %cst_57 : f32 to vector<8x128xf32>
    %116 = arith.mulf %115, %114 : vector<8x128xf32>
    %117 = math.tanh %116 : vector<8x128xf32>
    %cst_58 = arith.constant 5.000000e-01 : f32
    %118 = vector.broadcast %cst_58 : f32 to vector<8x128xf32>
    %119 = arith.mulf %118, %117 : vector<8x128xf32>
    %cst_59 = arith.constant 5.000000e-01 : f32
    %120 = vector.broadcast %cst_59 : f32 to vector<8x128xf32>
    %121 = arith.addf %119, %120 : vector<8x128xf32>
    %122 = vector.extract_strided_slice %113 {offsets = [0, 128], sizes = [8, 128], strides = [1, 1]} : vector<8x512xf32> to vector<8x128xf32>
    %cst_60 = arith.constant 5.000000e-01 : f32
    %123 = vector.broadcast %cst_60 : f32 to vector<8x128xf32>
    %124 = arith.mulf %123, %122 : vector<8x128xf32>
    %125 = math.tanh %124 : vector<8x128xf32>
    %cst_61 = arith.constant 5.000000e-01 : f32
    %126 = vector.broadcast %cst_61 : f32 to vector<8x128xf32>
    %127 = arith.mulf %126, %125 : vector<8x128xf32>
    %cst_62 = arith.constant 5.000000e-01 : f32
    %128 = vector.broadcast %cst_62 : f32 to vector<8x128xf32>
    %129 = arith.addf %127, %128 : vector<8x128xf32>
    %130 = vector.extract_strided_slice %113 {offsets = [0, 256], sizes = [8, 128], strides = [1, 1]} : vector<8x512xf32> to vector<8x128xf32>
    %131 = math.tanh %130 : vector<8x128xf32>
    %132 = vector.extract_strided_slice %113 {offsets = [0, 384], sizes = [8, 128], strides = [1, 1]} : vector<8x512xf32> to vector<8x128xf32>
    %cst_63 = arith.constant 5.000000e-01 : f32
    %133 = vector.broadcast %cst_63 : f32 to vector<8x128xf32>
    %134 = arith.mulf %133, %132 : vector<8x128xf32>
    %135 = math.tanh %134 : vector<8x128xf32>
    %cst_64 = arith.constant 5.000000e-01 : f32
    %136 = vector.broadcast %cst_64 : f32 to vector<8x128xf32>
    %137 = arith.mulf %136, %135 : vector<8x128xf32>
    %cst_65 = arith.constant 5.000000e-01 : f32
    %138 = vector.broadcast %cst_65 : f32 to vector<8x128xf32>
    %139 = arith.addf %137, %138 : vector<8x128xf32>
    %c0_66 = arith.constant 0 : index
    %c0_67 = arith.constant 0 : index
    %140 = vector.load %arg9[%c0_66, %c0_67] : memref<8x128xf32, #tpu.memory_space<vmem>>, vector<8x128xf32>
    %141 = arith.mulf %129, %140 : vector<8x128xf32>
    %142 = arith.mulf %121, %131 : vector<8x128xf32>
    %143 = arith.addf %141, %142 : vector<8x128xf32>
    %144 = math.tanh %143 : vector<8x128xf32>
    %145 = arith.mulf %139, %144 : vector<8x128xf32>
    %146 = vector.broadcast %106 : i32 to vector<8x1xi32>
    %147 = arith.cmpi slt, %146, %3 : vector<8x1xi32>
    %148 = vector.shape_cast %147 : vector<8x1xi1> to vector<8x1xi1>
    %149 = vector.broadcast %148 : vector<8x1xi1> to vector<8x128xi1>
    %c0_68 = arith.constant 0 : index
    %c0_69 = arith.constant 0 : index
    %150 = vector.load %arg8[%c0_68, %c0_69] : memref<8x128xf32, #tpu.memory_space<vmem>>, vector<8x128xf32>
    %151 = arith.select %149, %145, %150 : vector<8x128xi1>, vector<8x128xf32>
    %c0_70 = arith.constant 0 : index
    %c0_71 = arith.constant 0 : index
    %152 = vector.load %arg8[%c0_70, %c0_71] : memref<8x128xf32, #tpu.memory_space<vmem>>, vector<8x128xf32>
    tpu.vector_store %arg8[%c0_70, %c0_71], %151 {strides = array<i32>} : memref<8x128xf32, #tpu.memory_space<vmem>>, vector<8x128xf32>,
    %c0_72 = arith.constant 0 : index
    %c0_73 = arith.constant 0 : index
    %153 = vector.load %arg9[%c0_72, %c0_73] : memref<8x128xf32, #tpu.memory_space<vmem>>, vector<8x128xf32>
    %154 = arith.select %149, %143, %153 : vector<8x128xi1>, vector<8x128xf32>
    %c0_74 = arith.constant 0 : index
    %c0_75 = arith.constant 0 : index
    %155 = vector.load %arg9[%c0_74, %c0_75] : memref<8x128xf32, #tpu.memory_space<vmem>>, vector<8x128xf32>
    tpu.vector_store %arg9[%c0_74, %c0_75], %154 {strides = array<i32>} : memref<8x128xf32, #tpu.memory_space<vmem>>, vector<8x128xf32>,
    %c3_i32 = arith.constant 3 : i32
    %156 = arith.addi %5, %c3_i32 : i32
    %157 = arith.index_cast %c3_i32 : i32 to index
    %c0_76 = arith.constant 0 : index
    %c0_77 = arith.constant 0 : index
    %158 = vector.load %arg3[%157, %c0_76, %c0_77] : memref<4x8x512xf32, #tpu.memory_space<vmem>>, vector<1x8x512xf32>
    %159 = vector.shape_cast %158 : vector<1x8x512xf32> to vector<8x512xf32>
    %c0_78 = arith.constant 0 : index
    %c0_79 = arith.constant 0 : index
    %160 = vector.load %arg8[%c0_78, %c0_79] : memref<8x128xf32, #tpu.memory_space<vmem>>, vector<8x128xf32>
    %161 = arith.truncf %160 : vector<8x128xf32> to vector<8x128xbf16>
    %cst_80 = arith.constant dense<0.000000e+00> : vector<8x512xf32>
    %162 = tpu.matmul %161, %4, %cst_80 {dimension_numbers = #tpu.dot_dimension_numbers<[1], [0], [0], [1], [0, 0, 1, 1], [], []>} : vector<8x128xbf16>, vector<128x512xbf16>, vector<8x512xf32> -> vector<8x512xf32>
    %163 = arith.addf %159, %162 : vector<8x512xf32>
    %164 = vector.extract_strided_slice %163 {offsets = [0, 0], sizes = [8, 128], strides = [1, 1]} : vector<8x512xf32> to vector<8x128xf32>
    %cst_81 = arith.constant 5.000000e-01 : f32
    %165 = vector.broadcast %cst_81 : f32 to vector<8x128xf32>
    %166 = arith.mulf %165, %164 : vector<8x128xf32>
    %167 = math.tanh %166 : vector<8x128xf32>
    %cst_82 = arith.constant 5.000000e-01 : f32
    %168 = vector.broadcast %cst_82 : f32 to vector<8x128xf32>
    %169 = arith.mulf %168, %167 : vector<8x128xf32>
    %cst_83 = arith.constant 5.000000e-01 : f32
    %170 = vector.broadcast %cst_83 : f32 to vector<8x128xf32>
    %171 = arith.addf %169, %170 : vector<8x128xf32>
    %172 = vector.extract_strided_slice %163 {offsets = [0, 128], sizes = [8, 128], strides = [1, 1]} : vector<8x512xf32> to vector<8x128xf32>
    %cst_84 = arith.constant 5.000000e-01 : f32
    %173 = vector.broadcast %cst_84 : f32 to vector<8x128xf32>
    %174 = arith.mulf %173, %172 : vector<8x128xf32>
    %175 = math.tanh %174 : vector<8x128xf32>
    %cst_85 = arith.constant 5.000000e-01 : f32
    %176 = vector.broadcast %cst_85 : f32 to vector<8x128xf32>
    %177 = arith.mulf %176, %175 : vector<8x128xf32>
    %cst_86 = arith.constant 5.000000e-01 : f32
    %178 = vector.broadcast %cst_86 : f32 to vector<8x128xf32>
    %179 = arith.addf %177, %178 : vector<8x128xf32>
    %180 = vector.extract_strided_slice %163 {offsets = [0, 256], sizes = [8, 128], strides = [1, 1]} : vector<8x512xf32> to vector<8x128xf32>
    %181 = math.tanh %180 : vector<8x128xf32>
    %182 = vector.extract_strided_slice %163 {offsets = [0, 384], sizes = [8, 128], strides = [1, 1]} : vector<8x512xf32> to vector<8x128xf32>
    %cst_87 = arith.constant 5.000000e-01 : f32
    %183 = vector.broadcast %cst_87 : f32 to vector<8x128xf32>
    %184 = arith.mulf %183, %182 : vector<8x128xf32>
    %185 = math.tanh %184 : vector<8x128xf32>
    %cst_88 = arith.constant 5.000000e-01 : f32
    %186 = vector.broadcast %cst_88 : f32 to vector<8x128xf32>
    %187 = arith.mulf %186, %185 : vector<8x128xf32>
    %cst_89 = arith.constant 5.000000e-01 : f32
    %188 = vector.broadcast %cst_89 : f32 to vector<8x128xf32>
    %189 = arith.addf %187, %188 : vector<8x128xf32>
    %c0_90 = arith.constant 0 : index
    %c0_91 = arith.constant 0 : index
    %190 = vector.load %arg9[%c0_90, %c0_91] : memref<8x128xf32, #tpu.memory_space<vmem>>, vector<8x128xf32>
    %191 = arith.mulf %179, %190 : vector<8x128xf32>
    %192 = arith.mulf %171, %181 : vector<8x128xf32>
    %193 = arith.addf %191, %192 : vector<8x128xf32>
    %194 = math.tanh %193 : vector<8x128xf32>
    %195 = arith.mulf %189, %194 : vector<8x128xf32>
    %196 = vector.broadcast %156 : i32 to vector<8x1xi32>
    %197 = arith.cmpi slt, %196, %3 : vector<8x1xi32>
    %198 = vector.shape_cast %197 : vector<8x1xi1> to vector<8x1xi1>
    %199 = vector.broadcast %198 : vector<8x1xi1> to vector<8x128xi1>
    %c0_92 = arith.constant 0 : index
    %c0_93 = arith.constant 0 : index
    %200 = vector.load %arg8[%c0_92, %c0_93] : memref<8x128xf32, #tpu.memory_space<vmem>>, vector<8x128xf32>
    %201 = arith.select %199, %195, %200 : vector<8x128xi1>, vector<8x128xf32>
    %c0_94 = arith.constant 0 : index
    %c0_95 = arith.constant 0 : index
    %202 = vector.load %arg8[%c0_94, %c0_95] : memref<8x128xf32, #tpu.memory_space<vmem>>, vector<8x128xf32>
    tpu.vector_store %arg8[%c0_94, %c0_95], %201 {strides = array<i32>} : memref<8x128xf32, #tpu.memory_space<vmem>>, vector<8x128xf32>,
    %c0_96 = arith.constant 0 : index
    %c0_97 = arith.constant 0 : index
    %203 = vector.load %arg9[%c0_96, %c0_97] : memref<8x128xf32, #tpu.memory_space<vmem>>, vector<8x128xf32>
    %204 = arith.select %199, %193, %203 : vector<8x128xi1>, vector<8x128xf32>
    %c0_98 = arith.constant 0 : index
    %c0_99 = arith.constant 0 : index
    %205 = vector.load %arg9[%c0_98, %c0_99] : memref<8x128xf32, #tpu.memory_space<vmem>>, vector<8x128xf32>
    tpu.vector_store %arg9[%c0_98, %c0_99], %204 {strides = array<i32>} : memref<8x128xf32, #tpu.memory_space<vmem>>, vector<8x128xf32>,
    %c4_i32_100 = arith.constant 4 : i32
    %c1_i32_101 = arith.constant 1 : i32
    %206 = arith.cmpi eq, %arg1, %c1_i32_101 : i32
    %207 = arith.extui %206 : i1 to i32
    %c0_i32_102 = arith.constant 0 : i32
    %208 = arith.cmpi ne, %207, %c0_i32_102 : i32
    scf.if %208 {
      %c0_103 = arith.constant 0 : index
      %c0_104 = arith.constant 0 : index
      %209 = vector.load %arg8[%c0_103, %c0_104] : memref<8x128xf32, #tpu.memory_space<vmem>>, vector<8x128xf32>
      %210 = arith.truncf %209 : vector<8x128xf32> to vector<8x128xbf16>
      %c0_105 = arith.constant 0 : index
      %c0_106 = arith.constant 0 : index
      %211 = vector.load %arg5[%c0_105, %c0_106] : memref<128x128xbf16, #tpu.memory_space<vmem>>, vector<128x128xbf16>
      %cst_107 = arith.constant dense<0.000000e+00> : vector<8x128xf32>
      %212 = tpu.matmul %210, %211, %cst_107 {dimension_numbers = #tpu.dot_dimension_numbers<[1], [0], [0], [1], [0, 0, 1, 1], [], []>} : vector<8x128xbf16>, vector<128x128xbf16>, vector<8x128xf32> -> vector<8x128xf32>
      %c0_108 = arith.constant 0 : index
      %c0_109 = arith.constant 0 : index
      %213 = vector.load %arg6[%c0_108, %c0_109] : memref<1x128xf32, #tpu.memory_space<vmem>>, vector<1x128xf32>
      %214 = vector.broadcast %213 : vector<1x128xf32> to vector<8x128xf32>
      %215 = arith.addf %212, %214 : vector<8x128xf32>
      %cst_110 = arith.constant dense<0xFF800000> : vector<8xf32>
      %216 = vector.multi_reduction <maximumf>, %215, %cst_110 [1] : vector<8x128xf32> to vector<8xf32>
      %217 = vector.shape_cast %216 : vector<8xf32> to vector<8x1xf32>
      %218 = vector.broadcast %217 : vector<8x1xf32> to vector<8x128xf32>
      %219 = arith.subf %215, %218 : vector<8x128xf32>
      %220 = math.exp %219 : vector<8x128xf32>
      %cst_111 = arith.constant dense<0.000000e+00> : vector<8xf32>
      %221 = vector.multi_reduction <add>, %220, %cst_111 [1] : vector<8x128xf32> to vector<8xf32>
      %222 = vector.shape_cast %221 : vector<8xf32> to vector<8x1xf32>
      %223 = math.log %222 : vector<8x1xf32>
      %224 = arith.addf %223, %217 : vector<8x1xf32>
      %225 = vector.broadcast %224 : vector<8x1xf32> to vector<8x128xf32>
      %226 = arith.subf %215, %225 : vector<8x128xf32>
      %c0_112 = arith.constant 0 : index
      %c0_113 = arith.constant 0 : index
      %227 = vector.load %arg7[%c0_112, %c0_113] : memref<8x128xf32, #tpu.memory_space<vmem>>, vector<8x128xf32>
      tpu.vector_store %arg7[%c0_112, %c0_113], %226 {strides = array<i32>} : memref<8x128xf32, #tpu.memory_space<vmem>>, vector<8x128xf32>,
    } else {
    }
    return
  }
  func.func @transform_0(%arg0: i32, %arg1: i32) -> (i32, i32) {
    %c0_i32 = arith.constant 0 : i32
    %c0_i32_0 = arith.constant 0 : i32
    return %arg0, %c0_i32 : i32, i32
  }
  func.func @transform_1(%arg0: i32, %arg1: i32) -> (i32, i32, i32) {
    %c0_i32 = arith.constant 0 : i32
    %c0_i32_0 = arith.constant 0 : i32
    return %arg1, %arg0, %c0_i32 : i32, i32, i32
  }
  func.func @transform_2(%arg0: i32, %arg1: i32) -> (i32, i32) {
    %c0_i32 = arith.constant 0 : i32
    %c0_i32_0 = arith.constant 0 : i32
    %c0_i32_1 = arith.constant 0 : i32
    return %c0_i32, %c0_i32_0 : i32, i32
  }
  func.func @transform_3(%arg0: i32, %arg1: i32) -> (i32, i32) {
    %c0_i32 = arith.constant 0 : i32
    %c0_i32_0 = arith.constant 0 : i32
    %c0_i32_1 = arith.constant 0 : i32
    return %c0_i32, %c0_i32_0 : i32, i32
  }
  func.func @transform_4(%arg0: i32, %arg1: i32) -> (i32, i32) {
    %c0_i32 = arith.constant 0 : i32
    %c0_i32_0 = arith.constant 0 : i32
    %c0_i32_1 = arith.constant 0 : i32
    return %c0_i32, %c0_i32_0 : i32, i32
  }
  func.func @transform_5(%arg0: i32, %arg1: i32) -> (i32, i32) {
    %c0_i32 = arith.constant 0 : i32
    %c0_i32_0 = arith.constant 0 : i32
    return %arg0, %c0_i32 : i32, i32
  }
}

</mosaic_0001>

<bundles_post_ra>
// kernel: tpu_custom_call.1
= control target key start
LH: loop header
LB: loop body
LE: loop exit
PB: predicated region body
PF: predicated region fallthrough
CT: control target
= control target key end

     0   :  { %10 = vsyncpa [#allocation5], 0  ;;  %s2053_s0 = inlined_call_operand.vmem [shape: s32[8,1], index: 0, kind: input, shape index: {}]   ;;  %s2054_s1 = inlined_call_operand.hbm [shape: f32[8,8,512], index: 1, kind: input, shape index: {}]   ;;  %s2055_s2 = inlined_call_operand.hbm [shape: bf16[128,512], index: 2, kind: input, shape index: {}]   ;;  %s2056_s3 = inlined_call_operand.hbm [shape: bf16[128,128], index: 3, kind: input, shape index: {}]   ;;  %s2057_s4 = inlined_call_operand.vmem [shape: f32[1,128], index: 4, kind: input, shape index: {}]   ;;  %s2058_s5 = inlined_call_operand.hbm [shape: f32[8,128], index: 5, kind: output, shape index: {}]  }
   0x1   :  { %12 = vsyncpa [#allocation5 + $0x1], 0 }
   0x2   :  { %13 = vsyncpa [#allocation8], 0 }
   0x3   :  { %14 = vsyncpa [#allocation6], 0  ;;  %s1684_s18 = smov 0   ;;  %s1686_s19 = smov 0  }
   0x4   :  { %s1688_s20 = smov 0   ;;  %s1690_s21 = smov 0  }
   0x5   :  { %s1692_s22 = smov 0   ;;  %s1694_s23 = smov 0  }
   0x6 LB: > { %s2059_s24 = sadd.s32 4294967295, %s1641_s23   ;;  %p80_p0 = scmp.ne.s32.totalorder %s1625_s19, %s1621_s18  ;;  %s1641_s23 = sphi %s1694_s23, %s20_s23   ;;  %s1637_s22 = sphi %s1692_s22, %s2069_s22   ;;  %s1633_s21 = sphi %s1690_s21, %s2068_s21   ;;  %s1629_s20 = sphi %s1688_s20, %s2067_s20   ;;  %s1625_s19 = sphi %s1686_s19, %s2066_s19   ;;  %s1621_s18 = sphi %s1684_s18, %s2065_s18  }
   0x7   : > { %p1716_p1 = scmp.eq.s32.totalorder %s2059_s24, 0  ;;  %p1093_p2 = scmp.ge.s32.totalorder %s1641_s23, 1 }
   0x8   : > { %p180_p3 = scmp.lt.s32.totalorder %s1641_s23, 3  ;;  %s198_s29 = sshll.u32 %s2055_s2, 4  ;;  %s199_s29 = int_to_ptr.hbm [resolvable:$true] %s198_s29 }
   0x9   : > { %p1724_p4 = por %p1716_p1, %p80_p0  ;;  %s1643_s6 = smov [#allocation7]  }
   0xa   : > { %p1731_p5 = pnand %p1093_p2, %p180_p3  ;;  %s200_s7 = sshll.u32 %s1643_s6, 4  ;;  %s201_s7 = int_to_ptr.vmem [resolvable:$true] %s200_s7 }
   0xb   : > { %s212_s10 = sshll.u32 %s2056_s3, 4  ;;  %s1644_s11 = smov 256   ;;  %s213_s10 = int_to_ptr.hbm [resolvable:$true] %s212_s10 }
   0xc   : > { %p1341_p6 = pneg %p1731_p5  ;;  %s1645_s12 = smov 16  }
   0xd   : > { %s1646_s13 = smov [#allocation9]   ;;  %s1647_s15 = smov 64  }
   0xe   : > { %p1342_p7 = pnand %p1341_p6, %p1716_p1  ;;  %s214_s14 = sshll.u32 %s1646_s13, 4  ;;  %s215_s14 = int_to_ptr.vmem [resolvable:$true] %s214_s14 }
   0xf   : > { %s1648_s16 = smov 4   ;;  %s29_s17 = sadd.s32 1, %s1637_s22 }
  0x10   : > { %1344 = dma.hbm_to_vmem [thread:$0]  (!%p1342_p7), %s199_s29, 4096, %s201_s7, [#allocation8], %s1644_s11, %s1644_s11, %s1645_s12  }
  0x11   : > { %1347 = dma.hbm_to_vmem [thread:$0]  (!%p1342_p7), %s213_s10, 1024, %s215_s14, [#allocation8], %s1647_s15, %s1647_s15, %s1648_s16  }
  0x12   : > { %s67_s18 = sadd.s32 1, %s1629_s20  ;;  %p30_p8 = scmp.ge.s32.totalorder %s29_s17, 2 }
  0x13   : > { %p74_p9 = scmp.ne.s32.totalorder %s1629_s20, %s1625_s19  ;;  %p75_p10 = scmp.eq.s32.totalorder %s1641_s23, 0 }
  0x14   : > { %p1354_p11 = scmp.lt.s32.totalorder %s1641_s23, 2  ;;  %s2071_s17 = smov (%p30_p8, %s29_s17), 0 }
  0x15   : > { %p1750_p12 = por %p75_p10, %p74_p9  ;;  %s231_s28 = sand.u32 1, %s1629_s20  }
  0x16   : > { %s62_s29 = ssub.s32 %s1637_s22, %s2071_s17  ;;  %s1098_s6 = sshll.u32 %s231_s28, 7 }
  0x17   : > { %p65_p13 = scmp.eq.s32.totalorder %s62_s29, 0  ;;  %s1286_s7 = sshll.u32 %s1637_s22, 7 }
  0x18   : > { %s243_s11 = scalar_lea.hbm %s2054_s1, %s1286_s7  ;;  %s235_s12 = scalar_lea.vmem [#allocation4], %s1098_s6 }
  0x19   : > { %s1759_s8 = scalar_select %p65_p13, %s1629_s20, %s67_s18  }
  0x1a   : > { %s246_s13 = sshll.u32 %s235_s12, 4  ;;  %s244_s14 = sshll.u32 %s243_s11, 4  ;;  %s247_s13 = int_to_ptr.vmem [resolvable:$true] %s246_s13  ;;  %s245_s14 = int_to_ptr.hbm [resolvable:$true] %s244_s14 }
  0x1b   : > { %p1349_p0 = pnand %p1354_p11, %p1750_p12  ;;  %s232_s15 = scalar_lea.sflag [#allocation5], %s231_s28 }
  0x1c   : > { %s1649_s16 = smov 512   ;;  %s1650_s24 = smov 32  }
  0x1d   : > { %1351 = dma.hbm_to_vmem [thread:$0]  (!%p1349_p0), %s245_s14, 2048, %s247_s13, %s232_s15, %s1649_s16, %s1649_s16, %s1650_s24  }
  0x1e   : > { %258 = sbr.rel (%p1731_p5) target bundleno = 1136 (0x470), region = 40  ;;  %s260_s18 = sand.u32 (!%p1731_p5), 1, %s1625_s19  }
  0x1f   : > { %s1103_s29 = sshll.u32 (!%p1731_p5), %s260_s18, 7  ;;  %s261_s7 = scalar_lea.sflag (!%p1731_p5), [#allocation5], %s260_s18 }
  0x20   : > { %s1771_s6 = scalar_lea.vmem (!%p1731_p5), [#allocation4], %s1103_s29 }
  0x23   : > { %1608 = dma.done.wait (%p1724_p4), %s261_s7, 2048  }
  0x24   : > { %1610 = vsyncadd (%p1724_p4), %s261_s7, 4294965248 }
  0x25   : > { %1612 = dma.done.wait (%p1716_p1), [#allocation8], 5120  }
  0x26   : > { %1614 = vsyncadd (%p1716_p1), [#allocation8], 4294962176  ;;  %p1106_p2 = scmp.ne.s32.totalorder %s1633_s21, 0 }
  0x28   : > { %309 = sbr.rel (%p1106_p2) target bundleno = 48 (0x30), region = 56 }
  0x2d   : > { %v1651_v0 = vmov 0.0  }
  0x2e   : > { %310 = vst [vmem:[#allocation2] sm:$0xff] %v1651_v0 }
  0x2f   : > { %311 = vst [vmem:[#allocation3] sm:$0xff] %v1651_v0 }
  0x30 PF: > { %v1222_v1 = vld [vmem:[#allocation7 + $0xe0] sm:$0xf]  ;;  %v1317_v2 = vld [vmem:[#allocation7 + $0xec] sm:$0xf0]  ;;  %v1315_v3 = vld [vmem:[#allocation7 + $0xe4] sm:$0xf] }
  0x31   : > { %v1782_v4 = vor.u32 %v1317_v2, %v1222_v1  ;;  %v1224_v5 = vld [vmem:[#allocation7 + $0xf0] sm:$0xf0]  ;;  %v1230_v6 = vld [vmem:[#allocation7 + $0xe8] sm:$0xf]  ;;  %v1318_v7 = vld [vmem:[#allocation7 + $0xf4] sm:$0xf0] }
  0x32   : > { %v1784_v8 = vor.u32 %v1315_v3, %v1224_v5  ;;  %v1786_v9 = vor.u32 %v1318_v7, %v1230_v6  ;;  %v1316_v10 = vld [vmem:[#allocation7 + $0xec] sm:$0xf]  ;;  %v1232_v11 = vld [vmem:[#allocation7 + $0xf8] sm:$0xf0]  ;;  %v1206_v12 = vld [vmem:[#allocation7 + $0xc0] sm:$0xf] }
  0x33   : > { %512 = vmatpush.bf16.msra.mxu0 %v1782_v4  ;;  %v1789_v13 = vor.u32 %v1316_v10, %v1232_v11  ;;  %v1313_v14 = vld [vmem:[#allocation7 + $0xcc] sm:$0xf0]  ;;  %v1311_v15 = vld [vmem:[#allocation7 + $0xc4] sm:$0xf]  ;;  %v1208_v16 = vld [vmem:[#allocation7 + $0xd0] sm:$0xf0] }
  0x34   : > { %525 = vmatpush.bf16.msra.mxu1 %v1784_v8  ;;  %538 = vmatpush.bf16.msra.mxu2 %v1786_v9  ;;  %v1793_v17 = vor.u32 %v1313_v14, %v1206_v12  ;;  %v1795_v18 = vor.u32 %v1311_v15, %v1208_v16  ;;  %v1214_v19 = vld [vmem:[#allocation7 + $0xc8] sm:$0xf]  ;;  %v1314_v20 = vld [vmem:[#allocation7 + $0xd4] sm:$0xf0]  ;;  %v1312_v21 = vld [vmem:[#allocation7 + $0xcc] sm:$0xf] }
  0x35   : > { %551 = vmatpush.bf16.msra.mxu3 %v1789_v13  ;;  %v1798_v22 = vor.u32 %v1314_v20, %v1214_v19  ;;  %v1216_v23 = vld [vmem:[#allocation7 + $0xd8] sm:$0xf0]  ;;  %v1190_v24 = vld [vmem:[#allocation7 + $0xa0] sm:$0xf]  ;;  %v1309_v25 = vld [vmem:[#allocation7 + $0xac] sm:$0xf0] }
  0x36   : > { %v1800_v26 = vor.u32 %v1312_v21, %v1216_v23  ;;  %v1307_v27 = vld [vmem:[#allocation7 + $0xa4] sm:$0xf]  ;;  %v1192_v28 = vld [vmem:[#allocation7 + $0xb0] sm:$0xf0]  ;;  %v1198_v29 = vld [vmem:[#allocation7 + $0xa8] sm:$0xf]  ;;  %v1803_v30 = vor.u32 %v1309_v25, %v1190_v24 }
  0x37   : > { %513 = vmatpush.bf16.msra.mxu0 %v1793_v17  ;;  %v1310_v31 = vld [vmem:[#allocation7 + $0xb4] sm:$0xf0]  ;;  %v1308_v32 = vld [vmem:[#allocation7 + $0xac] sm:$0xf]  ;;  %v1200_v33 = vld [vmem:[#allocation7 + $0xb8] sm:$0xf0]  ;;  %v1807_v34 = vor.u32 %v1307_v27, %v1192_v28 }
  0x38   : > { %526 = vmatpush.bf16.msra.mxu1 %v1795_v18  ;;  %539 = vmatpush.bf16.msra.mxu2 %v1798_v22  ;;  %v1809_v35 = vor.u32 %v1310_v31, %v1198_v29  ;;  %v1174_v36 = vld [vmem:[#allocation7 + $0x80] sm:$0xf]  ;;  %v1305_v37 = vld [vmem:[#allocation7 + $0x8c] sm:$0xf0]  ;;  %v1303_v38 = vld [vmem:[#allocation7 + $0x84] sm:$0xf]  ;;  %v1812_v39 = vor.u32 %v1308_v32, %v1200_v33 }
  0x39   : > { %552 = vmatpush.bf16.msra.mxu3 %v1800_v26  ;;  %v1176_v40 = vld [vmem:[#allocation7 + $0x90] sm:$0xf0]  ;;  %v1182_v41 = vld [vmem:[#allocation7 + $0x88] sm:$0xf]  ;;  %v1306_v42 = vld [vmem:[#allocation7 + $0x94] sm:$0xf0]  ;;  %v1815_v45 = vor.u32 %v1305_v37, %v1174_v36 }
  0x3a   : > { %v1304_v43 = vld [vmem:[#allocation7 + $0x8c] sm:$0xf]  ;;  %v1184_v44 = vld [vmem:[#allocation7 + $0x98] sm:$0xf0]  ;;  %v1819_v46 = vor.u32 %v1303_v38, %v1176_v40  ;;  %v1821_v47 = vor.u32 %v1306_v42, %v1182_v41  ;;  %v1158_v48 = vld [vmem:[#allocation7 + $0x60] sm:$0xf] }
  0x3b   : > { %514 = vmatpush.bf16.msra.mxu0 %v1803_v30  ;;  %v1301_v49 = vld [vmem:[#allocation7 + $0x6c] sm:$0xf0]  ;;  %v1299_v50 = vld [vmem:[#allocation7 + $0x64] sm:$0xf]  ;;  %v1824_v51 = vor.u32 %v1304_v43, %v1184_v44  ;;  %v1160_v52 = vld [vmem:[#allocation7 + $0x70] sm:$0xf0] }
  0x3c   : > { %527 = vmatpush.bf16.msra.mxu1 %v1807_v34  ;;  %540 = vmatpush.bf16.msra.mxu2 %v1809_v35  ;;  %v1166_v53 = vld [vmem:[#allocation7 + $0x68] sm:$0xf]  ;;  %v1302_v54 = vld [vmem:[#allocation7 + $0x74] sm:$0xf0]  ;;  %v1300_v55 = vld [vmem:[#allocation7 + $0x6c] sm:$0xf]  ;;  %v1827_v57 = vor.u32 %v1301_v49, %v1158_v48  ;;  %v1831_v58 = vor.u32 %v1299_v50, %v1160_v52 }
  0x3d   : > { %553 = vmatpush.bf16.msra.mxu3 %v1812_v39  ;;  %v1168_v56 = vld [vmem:[#allocation7 + $0x78] sm:$0xf0]  ;;  %v1833_v59 = vor.u32 %v1302_v54, %v1166_v53  ;;  %v1142_v60 = vld [vmem:[#allocation7 + $0x40] sm:$0xf]  ;;  %v1297_v61 = vld [vmem:[#allocation7 + $0x4c] sm:$0xf0] }
  0x3e   : > { %v1295_v62 = vld [vmem:[#allocation7 + $0x44] sm:$0xf]  ;;  %v1836_v63 = vor.u32 %v1300_v55, %v1168_v56  ;;  %v1144_v0 = vld [vmem:[#allocation7 + $0x50] sm:$0xf0]  ;;  %v1150_v1 = vld [vmem:[#allocation7 + $0x48] sm:$0xf]  ;;  %v1839_v6 = vor.u32 %v1297_v61, %v1142_v60 }
  0x3f   : > { %515 = vmatpush.bf16.msra.mxu0 %v1815_v45  ;;  %v1298_v2 = vld [vmem:[#allocation7 + $0x54] sm:$0xf0]  ;;  %v1296_v3 = vld [vmem:[#allocation7 + $0x4c] sm:$0xf]  ;;  %v1152_v5 = vld [vmem:[#allocation7 + $0x58] sm:$0xf0]  ;;  %v1843_v11 = vor.u32 %v1295_v62, %v1144_v0 }
  0x40   : > { %528 = vmatpush.bf16.msra.mxu1 %v1819_v46  ;;  %541 = vmatpush.bf16.msra.mxu2 %v1821_v47  ;;  %v1126_v7 = vld [vmem:[#allocation7 + $0x20] sm:$0xf]  ;;  %v1293_v10 = vld [vmem:[#allocation7 + $0x2c] sm:$0xf0]  ;;  %v1845_v12 = vor.u32 %v1298_v2, %v1150_v1  ;;  %v1291_v14 = vld [vmem:[#allocation7 + $0x24] sm:$0xf]  ;;  %v1848_v19 = vor.u32 %v1296_v3, %v1152_v5 }
  0x41   : > { %554 = vmatpush.bf16.msra.mxu3 %v1824_v51  ;;  %v1128_v15 = vld [vmem:[#allocation7 + $0x30] sm:$0xf0]  ;;  %v1134_v16 = vld [vmem:[#allocation7 + $0x28] sm:$0xf]  ;;  %v1294_v20 = vld [vmem:[#allocation7 + $0x34] sm:$0xf0]  ;;  %v1863_v28 = vor.u32 %v1293_v10, %v1126_v7 }
  0x42   : > { %v1853_v21 = vld [vmem:[%s2053_s0] sm:$0xff]  ;;  %s1856_s26 = sshll.u32 %s1633_s21, 2  ;;  %v1292_v23 = vld [vmem:[#allocation7 + $0x2c] sm:$0xf]  ;;  %v1136_v24 = vld [vmem:[#allocation7 + $0x38] sm:$0xf0]  ;;  %v1868_v31 = vor.u32 %v1291_v14, %v1128_v15  ;;  %v1870_v32 = vor.u32 %v1294_v20, %v1134_v16 }
  0x43   : > { %516 = vmatpush.bf16.msra.mxu0 %v1827_v57  ;;  %v1652_v25 = vmov 0   ;;  %v587_v27 = vstv %s1856_s26  ;;  %s599_s30 = sadd.s32 1, %s1856_s26  ;;  %v1110_v29 = vld [vmem:[#allocation7] sm:$0xf]  ;;  %v1289_v33 = vld [vmem:[#allocation7 + $0xc] sm:$0xf0]  ;;  %v1874_v40 = vor.u32 %v1292_v23, %v1136_v24 }
  0x44   : > { %529 = vmatpush.bf16.msra.mxu1 %v1831_v58  ;;  %542 = vmatpush.bf16.msra.mxu2 %v1833_v59  ;;  %vm588_vm0 = vcmp.lt.s32.totalorder %v587_v27, %v1853_v21  ;;  %v1287_v36 = vld [vmem:[#allocation7 + $0x4] sm:$0xf]  ;;  %v682_v38 = vstv %s599_s30  ;;  %v1112_v41 = vld [vmem:[#allocation7 + $0x10] sm:$0xf0]  ;;  %v1118_v42 = vld [vmem:[#allocation7 + $0x8] sm:$0xf]  ;;  %v1877_v49 = vor.u32 %v1289_v33, %v1110_v29 }
  0x45   : > { %555 = vmatpush.bf16.msra.mxu3 %v1836_v63  ;;  %1418 = vset.pattern.permute.xlu0 %v1652_v25  ;;  %v589_v37 = vsel %vm588_vm0, 1, %v1652_v25  ;;  %v1290_v43 = vld [vmem:[#allocation7 + $0x14] sm:$0xf0]  ;;  %v1288_v44 = vld [vmem:[#allocation7 + $0xc] sm:$0xf]  ;;  %v1879_v50 = vld [vmem:[#allocation2] sm:$0xff]  ;;  %vm683_vm1 = vcmp.lt.s32.totalorder %v682_v38, %v1853_v21  ;;  %v1884_v52 = vor.u32 %v1287_v36, %v1112_v41 }
  0x46   : > { %1419 = vset.pattern.permute.xlu1 %v1652_v25  ;;  %591 = vperm.xlu0 %1418, %v589_v37   ;;  %v1120_v48 = vld [vmem:[#allocation7 + $0x18] sm:$0xf0]  ;;  %v1886_v53 = vor.u32 %v1290_v43, %v1118_v42  ;;  %v351_v55 = vpack.c.bf16 %v1879_v50, %v1879_v50  ;;  %v684_v56 = vsel %vm683_vm1, 1, %v1652_v25  ;;  %v346_v60 = vld [vmem:[%s1771_s6] sm:$0xff]  ;;  %v347_v61 = vld [vmem:[%s1771_s6 + $0x8] sm:$0xff]  ;;  %s694_s27 = sadd.s32 2, %s1856_s26 }
  0x47   : > { %517 = vmatpush.bf16.msra.mxu0 %v1839_v6  ;;  %v1889_v54 = vor.u32 %v1288_v44, %v1120_v48  ;;  %v348_v7 = vld [vmem:[%s1771_s6 + $0x10] sm:$0xff]  ;;  %v349_v10 = vld [vmem:[%s1771_s6 + $0x18] sm:$0xff]  ;;  %s789_s28 = sadd.s32 3, %s1856_s26  ;;  %p1248_p1 = scmp.ne.s32.totalorder %s1633_s21, 1 }
  0x48   : > { %530 = vmatpush.bf16.msra.mxu1 %v1843_v11  ;;  %543 = vmatpush.bf16.msra.mxu2 %v1845_v12  ;;  %v581_v41 = vld [vmem:[#allocation3] sm:$0xff] }
  0x49   : > { %556 = vmatpush.bf16.msra.mxu3 %v1848_v19 }
  0x4b   : > { %518 = vmatpush.bf16.msra.mxu0 %v1863_v28 }
  0x4c   : > { %531 = vmatpush.bf16.msra.mxu1 %v1868_v31  ;;  %544 = vmatpush.bf16.msra.mxu2 %v1870_v32 }
  0x4d   : > { %557 = vmatpush.bf16.msra.mxu3 %v1874_v40 }
  0x4e   : > { %686 = vperm.xlu0 %1418, %v684_v56  }
  0x4f   : > { %519 = vmatpush.bf16.msra.mxu0 %v1877_v49 }
  0x50   : > { %532 = vmatpush.bf16.msra.mxu1 %v1884_v52  ;;  %545 = vmatpush.bf16.msra.mxu2 %v1886_v53 }
  0x51   : > { %558 = vmatpush.bf16.msra.mxu3 %v1889_v54 }
  0x52   : > { %520 = vmatmul.bf16.vlgmr.msra.gmra.mxu0 %v351_v55 }
  0x53   : > { %533 = vmatmul.bf16.vlgmr.msra.gmra.mxu1 %v351_v55  ;;  %546 = vmatmul.bf16.vlgmr.msra.gmra.mxu2 %v351_v55 }
  0x54   : > { %620 = vmatpush.bf16.msrb.mxu1 %v1784_v8  ;;  %559 = vmatmul.bf16.vlgmr.msra.gmra.mxu3 %v351_v55 }
  0x55   : > { %607 = vmatpush.bf16.msrb.mxu0 %v1782_v4  ;;  %633 = vmatpush.bf16.msrb.mxu2 %v1786_v9 }
  0x56   : > { %646 = vmatpush.bf16.msrb.mxu3 %v1789_v13 }
  0x58   : > { %621 = vmatpush.bf16.msrb.mxu1 %v1795_v18 }
  0x59   : > { %608 = vmatpush.bf16.msrb.mxu0 %v1793_v17  ;;  %634 = vmatpush.bf16.msrb.mxu2 %v1798_v22 }
  0x5a   : > { %647 = vmatpush.bf16.msrb.mxu3 %v1800_v26 }
  0x5c   : > { %622 = vmatpush.bf16.msrb.mxu1 %v1807_v34 }
  0x5d   : > { %609 = vmatpush.bf16.msrb.mxu0 %v1803_v30  ;;  %635 = vmatpush.bf16.msrb.mxu2 %v1809_v35 }
  0x5e   : > { %648 = vmatpush.bf16.msrb.mxu3 %v1812_v39 }
  0x60   : > { %623 = vmatpush.bf16.msrb.mxu1 %v1819_v46 }
  0x61   : > { %610 = vmatpush.bf16.msrb.mxu0 %v1815_v45  ;;  %636 = vmatpush.bf16.msrb.mxu2 %v1821_v47 }
  0x62   : > { %649 = vmatpush.bf16.msrb.mxu3 %v1824_v51 }
  0x64   : > { %624 = vmatpush.bf16.msrb.mxu1 %v1831_v58 }
  0x65   : > { %611 = vmatpush.bf16.msrb.mxu0 %v1827_v57  ;;  %637 = vmatpush.bf16.msrb.mxu2 %v1833_v59 }
  0x66   : > { %650 = vmatpush.bf16.msrb.mxu3 %v1836_v63 }
  0x68   : > { %625 = vmatpush.bf16.msrb.mxu1 %v1843_v11 }
  0x69   : > { %612 = vmatpush.bf16.msrb.mxu0 %v1839_v6  ;;  %638 = vmatpush.bf16.msrb.mxu2 %v1845_v12 }
  0x6a   : > { %651 = vmatpush.bf16.msrb.mxu3 %v1848_v19 }
  0x6c   : > { %626 = vmatpush.bf16.msrb.mxu1 %v1868_v31 }
  0x6d   : > { %613 = vmatpush.bf16.msrb.mxu0 %v1863_v28  ;;  %639 = vmatpush.bf16.msrb.mxu2 %v1870_v32 }
  0x6e   : > { %652 = vmatpush.bf16.msrb.mxu3 %v1874_v40 }
  0x70   : > { %627 = vmatpush.bf16.msrb.mxu1 %v1884_v52 }
  0x71   : > { %614 = vmatpush.bf16.msrb.mxu0 %v1877_v49  ;;  %640 = vmatpush.bf16.msrb.mxu2 %v1886_v53 }
  0x72   : > { %653 = vmatpush.bf16.msrb.mxu3 %v1889_v54 }
  0x74   : > { %715 = vmatpush.bf16.msra.mxu1 %v1784_v8 }
  0x75   : > { %702 = vmatpush.bf16.msra.mxu0 %v1782_v4  ;;  %728 = vmatpush.bf16.msra.mxu2 %v1786_v9 }
  0x76   : > { %741 = vmatpush.bf16.msra.mxu3 %v1789_v13 }
  0x78   : > { %716 = vmatpush.bf16.msra.mxu1 %v1795_v18 }
  0x79   : > { %703 = vmatpush.bf16.msra.mxu0 %v1793_v17  ;;  %729 = vmatpush.bf16.msra.mxu2 %v1798_v22 }
  0x7a   : > { %742 = vmatpush.bf16.msra.mxu3 %v1800_v26 }
  0x7c   : > { %717 = vmatpush.bf16.msra.mxu1 %v1807_v34 }
  0x7d   : > { %704 = vmatpush.bf16.msra.mxu0 %v1803_v30  ;;  %730 = vmatpush.bf16.msra.mxu2 %v1809_v35 }
  0x7e   : > { %743 = vmatpush.bf16.msra.mxu3 %v1812_v39 }
  0x80   : > { %718 = vmatpush.bf16.msra.mxu1 %v1819_v46 }
  0x81   : > { %705 = vmatpush.bf16.msra.mxu0 %v1815_v45  ;;  %731 = vmatpush.bf16.msra.mxu2 %v1821_v47 }
  0x82   : > { %744 = vmatpush.bf16.msra.mxu3 %v1824_v51 }
  0x84   : > { %719 = vmatpush.bf16.msra.mxu1 %v1831_v58 }
  0x85   : > { %706 = vmatpush.bf16.msra.mxu0 %v1827_v57  ;;  %732 = vmatpush.bf16.msra.mxu2 %v1833_v59 }
  0x86   : > { %745 = vmatpush.bf16.msra.mxu3 %v1836_v63 }
  0x88   : > { %720 = vmatpush.bf16.msra.mxu1 %v1843_v11 }
  0x89   : > { %707 = vmatpush.bf16.msra.mxu0 %v1839_v6  ;;  %733 = vmatpush.bf16.msra.mxu2 %v1845_v12 }
  0x8a   : > { %746 = vmatpush.bf16.msra.mxu3 %v1848_v19 }
  0x8c   : > { %721 = vmatpush.bf16.msra.mxu1 %v1868_v31 }
  0x8d   : > { %708 = vmatpush.bf16.msra.mxu0 %v1863_v28  ;;  %734 = vmatpush.bf16.msra.mxu2 %v1870_v32 }
  0x8e   : > { %747 = vmatpush.bf16.msra.mxu3 %v1874_v40 }
  0x90   : > { %722 = vmatpush.bf16.msra.mxu1 %v1884_v52 }
  0x91   : > { %709 = vmatpush.bf16.msra.mxu0 %v1877_v49  ;;  %735 = vmatpush.bf16.msra.mxu2 %v1886_v53 }
  0x92   : > { %748 = vmatpush.bf16.msra.mxu3 %v1889_v54 }
  0xb8   : > { %v592_v44 = vpop.permute.xlu0 %591 }
  0xb9   : > { %vm593_vm2 = vcmp.eq.s32.totalorder %v592_v44, 1  ;;  %v1242_v44 = vld [vmem:[%s1771_s6 + $0x50] sm:$0xff] }
  0xcf   : > { %v521_v62 = vpop.f32.mrf.mxu0 }
  0xd0   : > { %v564_v0 = vadd.f32 %v521_v62, %v346_v60  ;;  %v534_v1 = vpop.f32.mrf.mxu1 }
  0xd1   : > { %v565_v2 = vadd.f32 %v534_v1, %v347_v61 }
  0xd2   : > { %v568_v3 = vmul.f32 0.5, %v564_v0 }
  0xd3   : > { %v572_v5 = vmul.f32 0.5, %v565_v2 }
  0xd4   : > { %1420 = vtanh.f32 %v568_v3 }
  0xd5   : > { %1422 = vtanh.f32 %v572_v5 }
  0xd6   : > { %v547_v14 = vpop.f32.mrf.mxu2 }
  0xd7   : > { %v566_v15 = vadd.f32 %v547_v14, %v348_v7  ;;  %v560_v16 = vpop.f32.mrf.mxu3  ;;  %v523_v20 = vpop.f32.mrf.mxu0 }
  0xd8   : > { %v567_v23 = vadd.f32 %v560_v16, %v349_v10  ;;  %v536_v24 = vpop.f32.mrf.mxu1 }
  0xd9   : > { %1424 = vtanh.f32 %v566_v15 }
  0xda   : > { %v1421_v27 = vpop.eup %1420  ;;  %v577_v29 = vmul.f32 0.5, %v567_v23 }
  0xdb   : > { %v1423_v33 = vpop.eup %1422  ;;  %v570_v36 = vmul.f32 0.5, %v1421_v27 }
  0xdc   : > { %v574_v37 = vmul.f32 0.5, %v1423_v33  ;;  %1426 = vtanh.f32 %v577_v29  ;;  %v1240_v29 = vld [vmem:[%s1771_s6 + $0x40] sm:$0xff]  ;;  %v1241_v33 = vld [vmem:[%s1771_s6 + $0x48] sm:$0xff] }
  0xdd   : > { %v571_v38 = vadd.f32 0.5, %v570_v36 }
  0xde   : > { %v575_v42 = vadd.f32 0.5, %v574_v37  ;;  %v549_v43 = vpop.f32.mrf.mxu2 }
  0xdf   : > { %v1425_v48 = vpop.eup %1424  ;;  %v562_v55 = vpop.f32.mrf.mxu3 }
  0xe0   : > { %v582_v56 = vmul.f32 %v581_v41, %v575_v42  ;;  %v583_v60 = vmul.f32 %v1425_v48, %v571_v38  ;;  %v1243_v48 = vld [vmem:[%s1771_s6 + $0x58] sm:$0xff] }
  0xe2   : > { %v1427_v61 = vpop.eup %1426  ;;  %v584_v62 = vadd.f32 %v583_v60, %v582_v56 }
  0xe3   : > { %v579_v0 = vmul.f32 0.5, %v1427_v61 }
  0xe4   : > { %1428 = vtanh.f32 %v584_v62  ;;  %v1966_v1 = vsel %vm593_vm2, %v584_v62, %v581_v41 }
  0xe5   : > { %v580_v2 = vadd.f32 0.5, %v579_v0 }
  0xea   : > { %v1429_v3 = vpop.eup %1428 }
  0xeb   : > { %v586_v5 = vmul.f32 %v1429_v3, %v580_v2 }
  0xed   : > { %v1969_v7 = vsel %vm593_vm2, %v586_v5, %v1879_v50 }
  0xee   : > { %v606_v10 = vpack.c.bf16 %v1969_v7, %v1969_v7 }
  0xf0   : > { %615 = vmatmul.bf16.vlgmr.msrb.gmra.mxu0 %v606_v10  ;;  %628 = vmatmul.bf16.vlgmr.msrb.gmra.mxu1 %v606_v10 }
  0xf1   : > { %641 = vmatmul.bf16.vlgmr.msrb.gmra.mxu2 %v606_v10  ;;  %654 = vmatmul.bf16.vlgmr.msrb.gmra.mxu3 %v606_v10 }
  0xf2   : > { %797 = vmatpush.bf16.msrb.mxu0 %v1782_v4  ;;  %810 = vmatpush.bf16.msrb.mxu1 %v1784_v8  ;;  %v1236_v4 = vld [vmem:[%s1771_s6 + $0x20] sm:$0xff]  ;;  %v1237_v8 = vld [vmem:[%s1771_s6 + $0x28] sm:$0xff] }
  0xf3   : > { %823 = vmatpush.bf16.msrb.mxu2 %v1786_v9  ;;  %836 = vmatpush.bf16.msrb.mxu3 %v1789_v13 }
  0xf6   : > { %798 = vmatpush.bf16.msrb.mxu0 %v1793_v17  ;;  %811 = vmatpush.bf16.msrb.mxu1 %v1795_v18 }
  0xf7   : > { %824 = vmatpush.bf16.msrb.mxu2 %v1798_v22  ;;  %837 = vmatpush.bf16.msrb.mxu3 %v1800_v26  ;;  %v777_v22 = vstv %s694_s27 }
  0xf8   : > { %vm778_vm3 = vcmp.lt.s32.totalorder %v777_v22, %v1853_v21 }
  0xfa   : > { %799 = vmatpush.bf16.msrb.mxu0 %v1803_v30  ;;  %812 = vmatpush.bf16.msrb.mxu1 %v1807_v34  ;;  %v779_v34 = vsel %vm778_vm3, 1, %v1652_v25 }
  0xfb   : > { %825 = vmatpush.bf16.msrb.mxu2 %v1809_v35  ;;  %838 = vmatpush.bf16.msrb.mxu3 %v1812_v39  ;;  %v872_v35 = vstv %s789_s28  ;;  %v1238_v39 = vld [vmem:[%s1771_s6 + $0x30] sm:$0xff] }
  0xfc   : > { %781 = vperm.xlu1 %1419, %v779_v34   ;;  %vm873_vm4 = vcmp.lt.s32.totalorder %v872_v35, %v1853_v21  ;;  %v687_v21 = vpop.permute.xlu0 %686 }
  0xfd   : > { %vm688_vm5 = vcmp.eq.s32.totalorder %v687_v21, 1 }
  0xfe   : > { %800 = vmatpush.bf16.msrb.mxu0 %v1815_v45  ;;  %813 = vmatpush.bf16.msrb.mxu1 %v1819_v46  ;;  %v1239_v45 = vld [vmem:[%s1771_s6 + $0x38] sm:$0xff] }
  0xff   : > { %826 = vmatpush.bf16.msrb.mxu2 %v1821_v47  ;;  %839 = vmatpush.bf16.msrb.mxu3 %v1824_v51 }
 0x102   : > { %801 = vmatpush.bf16.msrb.mxu0 %v1827_v57  ;;  %814 = vmatpush.bf16.msrb.mxu1 %v1831_v58 }
 0x103   : > { %827 = vmatpush.bf16.msrb.mxu2 %v1833_v59  ;;  %840 = vmatpush.bf16.msrb.mxu3 %v1836_v63 }
 0x106   : > { %802 = vmatpush.bf16.msrb.mxu0 %v1839_v6  ;;  %815 = vmatpush.bf16.msrb.mxu1 %v1843_v11  ;;  %v874_v6 = vsel %vm873_vm4, 1, %v1652_v25 }
 0x107   : > { %828 = vmatpush.bf16.msrb.mxu2 %v1845_v12  ;;  %841 = vmatpush.bf16.msrb.mxu3 %v1848_v19 }
 0x108   : > { %876 = vperm.xlu1 %1419, %v874_v6  }
 0x10a   : > { %803 = vmatpush.bf16.msrb.mxu0 %v1863_v28  ;;  %816 = vmatpush.bf16.msrb.mxu1 %v1868_v31 }
 0x10b   : > { %829 = vmatpush.bf16.msrb.mxu2 %v1870_v32  ;;  %842 = vmatpush.bf16.msrb.mxu3 %v1874_v40 }
 0x10e   : > { %804 = vmatpush.bf16.msrb.mxu0 %v1877_v49  ;;  %817 = vmatpush.bf16.msrb.mxu1 %v1884_v52 }
 0x10f   : > { %830 = vmatpush.bf16.msrb.mxu2 %v1886_v53  ;;  %843 = vmatpush.bf16.msrb.mxu3 %v1889_v54 }
 0x16d   : > { %v616_v9 = vpop.f32.mrf.mxu0  ;;  %v629_v13 = vpop.f32.mrf.mxu1 }
 0x16e   : > { %v659_v17 = vadd.f32 %v1236_v4, %v616_v9  ;;  %v660_v18 = vadd.f32 %v1237_v8, %v629_v13  ;;  %v782_v4 = vpop.permute.xlu1 %781 }
 0x16f   : > { %vm783_vm6 = vcmp.eq.s32.totalorder %v782_v4, 1 }
 0x170   : > { %v663_v26 = vmul.f32 0.5, %v659_v17  ;;  %v667_v30 = vmul.f32 0.5, %v660_v18 }
 0x172   : > { %1430 = vtanh.f32 %v663_v26 }
 0x173   : > { %1432 = vtanh.f32 %v667_v30 }
 0x174   : > { %v642_v46 = vpop.f32.mrf.mxu2  ;;  %v655_v47 = vpop.f32.mrf.mxu3 }
 0x175   : > { %v661_v51 = vadd.f32 %v1238_v39, %v642_v46  ;;  %v662_v57 = vadd.f32 %v1239_v45, %v655_v47  ;;  %v618_v58 = vpop.f32.mrf.mxu0  ;;  %v631_v59 = vpop.f32.mrf.mxu1 }
 0x176   : > { %v1245_v58 = vld [vmem:[%s1771_s6 + $0x68] sm:$0xff] }
 0x177   : > { %1434 = vtanh.f32 %v661_v51  ;;  %v672_v63 = vmul.f32 0.5, %v662_v57  ;;  %v1244_v57 = vld [vmem:[%s1771_s6 + $0x60] sm:$0xff] }
 0x178   : > { %v1431_v11 = vpop.eup %1430 }
 0x179   : > { %v1433_v12 = vpop.eup %1432  ;;  %v665_v19 = vmul.f32 0.5, %v1431_v11  ;;  %1436 = vtanh.f32 %v672_v63 }
 0x17a   : > { %v669_v28 = vmul.f32 0.5, %v1433_v12 }
 0x17b   : > { %v666_v31 = vadd.f32 0.5, %v665_v19 }
 0x17c   : > { %v670_v32 = vadd.f32 0.5, %v669_v28  ;;  %v644_v40 = vpop.f32.mrf.mxu2  ;;  %v657_v49 = vpop.f32.mrf.mxu3  ;;  %v1246_v28 = vld [vmem:[%s1771_s6 + $0x70] sm:$0xff] }
 0x17d   : > { %v1435_v50 = vpop.eup %1434 }
 0x17e   : > { %v677_v52 = vmul.f32 %v670_v32, %v1966_v1  ;;  %v678_v53 = vmul.f32 %v1435_v50, %v666_v31  ;;  %v1247_v31 = vld [vmem:[%s1771_s6 + $0x78] sm:$0xff] }
 0x17f   : > { %v1437_v54 = vpop.eup %1436 }
 0x180   : > { %v679_v14 = vadd.f32 %v678_v53, %v677_v52  ;;  %v674_v15 = vmul.f32 0.5, %v1437_v54 }
 0x182   : > { %1438 = vtanh.f32 %v679_v14  ;;  %v692_v25 = vsel %vm688_vm5, %v679_v14, %v1966_v1  ;;  %v675_v16 = vadd.f32 0.5, %v674_v15 }
 0x188   : > { %v1439_v20 = vpop.eup %1438 }
 0x189   : > { %v681_v23 = vmul.f32 %v1439_v20, %v675_v16 }
 0x18b   : > { %v689_v24 = vsel %vm688_vm5, %v681_v23, %v1969_v7 }
 0x18c   : > { %v701_v27 = vpack.c.bf16 %v689_v24, %v689_v24 }
 0x18e   : > { %710 = vmatmul.bf16.vlgmr.msra.gmra.mxu0 %v701_v27  ;;  %723 = vmatmul.bf16.vlgmr.msra.gmra.mxu1 %v701_v27 }
 0x18f   : > { %736 = vmatmul.bf16.vlgmr.msra.gmra.mxu2 %v701_v27  ;;  %749 = vmatmul.bf16.vlgmr.msra.gmra.mxu3 %v701_v27 }
 0x20b   : > { %v711_v36 = vpop.f32.mrf.mxu0  ;;  %v724_v37 = vpop.f32.mrf.mxu1 }
 0x20c   : > { %v754_v38 = vadd.f32 %v1240_v29, %v711_v36  ;;  %v755_v41 = vadd.f32 %v1241_v33, %v724_v37  ;;  %v877_v29 = vpop.permute.xlu1 %876 }
 0x20d   : > { %vm878_vm7 = vcmp.eq.s32.totalorder %v877_v29, 1 }
 0x20e   : > { %v758_v42 = vmul.f32 0.5, %v754_v38  ;;  %v762_v43 = vmul.f32 0.5, %v755_v41 }
 0x210   : > { %1440 = vtanh.f32 %v758_v42 }
 0x211   : > { %1442 = vtanh.f32 %v762_v43 }
 0x212   : > { %v737_v55 = vpop.f32.mrf.mxu2  ;;  %v750_v56 = vpop.f32.mrf.mxu3 }
 0x213   : > { %v756_v60 = vadd.f32 %v1242_v44, %v737_v55  ;;  %v757_v61 = vadd.f32 %v1243_v48, %v750_v56  ;;  %v713_v62 = vpop.f32.mrf.mxu0  ;;  %v726_v0 = vpop.f32.mrf.mxu1 }
 0x215   : > { %1444 = vtanh.f32 %v756_v60  ;;  %v767_v1 = vmul.f32 0.5, %v757_v61 }
 0x216   : > { %v1441_v2 = vpop.eup %1440 }
 0x217   : > { %v1443_v3 = vpop.eup %1442  ;;  %v760_v5 = vmul.f32 0.5, %v1441_v2  ;;  %1446 = vtanh.f32 %v767_v1 }
 0x218   : > { %v764_v7 = vmul.f32 0.5, %v1443_v3 }
 0x219   : > { %v761_v10 = vadd.f32 0.5, %v760_v5 }
 0x21a   : > { %v765_v8 = vadd.f32 0.5, %v764_v7  ;;  %v739_v9 = vpop.f32.mrf.mxu2  ;;  %v752_v13 = vpop.f32.mrf.mxu3 }
 0x21b   : > { %v1445_v17 = vpop.eup %1444 }
 0x21c   : > { %v772_v18 = vmul.f32 %v765_v8, %v692_v25  ;;  %v773_v22 = vmul.f32 %v1445_v17, %v761_v10 }
 0x21d   : > { %v1447_v26 = vpop.eup %1446 }
 0x21e   : > { %v774_v30 = vadd.f32 %v773_v22, %v772_v18  ;;  %v769_v35 = vmul.f32 0.5, %v1447_v26 }
 0x220   : > { %1448 = vtanh.f32 %v774_v30  ;;  %v787_v34 = vsel %vm783_vm6, %v774_v30, %v692_v25  ;;  %v770_v39 = vadd.f32 0.5, %v769_v35 }
 0x226   : > { %v1449_v45 = vpop.eup %1448 }
 0x227   : > { %v776_v46 = vmul.f32 %v1449_v45, %v770_v39 }
 0x229   : > { %v784_v47 = vsel %vm783_vm6, %v776_v46, %v689_v24 }
 0x22a   : > { %v796_v51 = vpack.c.bf16 %v784_v47, %v784_v47 }
 0x22c   : > { %805 = vmatmul.bf16.vlgmr.msrb.gmra.mxu0 %v796_v51  ;;  %818 = vmatmul.bf16.vlgmr.msrb.gmra.mxu1 %v796_v51 }
 0x22d   : > { %831 = vmatmul.bf16.vlgmr.msrb.gmra.mxu2 %v796_v51  ;;  %844 = vmatmul.bf16.vlgmr.msrb.gmra.mxu3 %v796_v51 }
 0x2a9   : > { %v806_v59 = vpop.f32.mrf.mxu0  ;;  %v819_v63 = vpop.f32.mrf.mxu1 }
 0x2aa   : > { %v849_v6 = vadd.f32 %v1244_v57, %v806_v59  ;;  %v850_v11 = vadd.f32 %v1245_v58, %v819_v63 }
 0x2ac   : > { %v853_v12 = vmul.f32 0.5, %v849_v6  ;;  %v857_v19 = vmul.f32 0.5, %v850_v11 }
 0x2ae   : > { %1450 = vtanh.f32 %v853_v12 }
 0x2af   : > { %1452 = vtanh.f32 %v857_v19 }
 0x2b0   : > { %v832_v32 = vpop.f32.mrf.mxu2  ;;  %v845_v40 = vpop.f32.mrf.mxu3 }
 0x2b1   : > { %v851_v49 = vadd.f32 %v1246_v28, %v832_v32  ;;  %v852_v50 = vadd.f32 %v1247_v31, %v845_v40  ;;  %v808_v21 = vpop.f32.mrf.mxu0  ;;  %v821_v52 = vpop.f32.mrf.mxu1 }
 0x2b3   : > { %1454 = vtanh.f32 %v851_v49  ;;  %v862_v53 = vmul.f32 0.5, %v852_v50 }
 0x2b4   : > { %v1451_v54 = vpop.eup %1450 }
 0x2b5   : > { %v1453_v14 = vpop.eup %1452  ;;  %v855_v25 = vmul.f32 0.5, %v1451_v54  ;;  %1456 = vtanh.f32 %v862_v53 }
 0x2b6   : > { %v859_v15 = vmul.f32 0.5, %v1453_v14 }
 0x2b7   : > { %v856_v16 = vadd.f32 0.5, %v855_v25 }
 0x2b8   : > { %v860_v20 = vadd.f32 0.5, %v859_v15  ;;  %v834_v23 = vpop.f32.mrf.mxu2  ;;  %v847_v24 = vpop.f32.mrf.mxu3 }
 0x2b9   : > { %v1455_v27 = vpop.eup %1454 }
 0x2ba   : > { %v867_v33 = vmul.f32 %v860_v20, %v787_v34  ;;  %v868_v36 = vmul.f32 %v1455_v27, %v856_v16 }
 0x2bb   : > { %v1457_v37 = vpop.eup %1456 }
 0x2bc   : > { %v869_v38 = vadd.f32 %v868_v36, %v867_v33  ;;  %v864_v42 = vmul.f32 0.5, %v1457_v37 }
 0x2be   : > { %1458 = vtanh.f32 %v869_v38  ;;  %v882_v41 = vsel %vm878_vm7, %v869_v38, %v787_v34  ;;  %v865_v43 = vadd.f32 0.5, %v864_v42 }
 0x2bf   : > { %883 = vst [vmem:[#allocation3] sm:$0xff] %v882_v41 }
 0x2c4   : > { %v1459_v44 = vpop.eup %1458  ;;  %887 = sbr.rel (%p1248_p1) target bundleno = 1130 (0x46a), region = 60 }
 0x2c5   : > { %v871_v48 = vmul.f32 %v1459_v44, %v865_v43 }
 0x2c7   : > { %v879_v55 = vsel %vm878_vm7, %v871_v48, %v784_v47 }
 0x2c8   : > { %880 = vst [vmem:[#allocation2] sm:$0xff] %v879_v55 }
 0x2c9   : > { %v1326_v56 = vld [vmem:[#allocation9 + $0x38] sm:$0xff]  ;;  %v1325_v60 = vld [vmem:[#allocation9 + $0x30] sm:$0xff]  ;;  %v1324_v61 = vld [vmem:[#allocation9 + $0x28] sm:$0xff] }
 0x2ca   : > { %958 = vmatpush.bf16.msra.mxu0 %v1326_v56  ;;  %v1323_v62 = vld [vmem:[#allocation9 + $0x20] sm:$0xff]  ;;  %v1322_v0 = vld [vmem:[#allocation9 + $0x18] sm:$0xff]  ;;  %v1321_v1 = vld [vmem:[#allocation9 + $0x10] sm:$0xff] }
 0x2cb   : > { %v1320_v2 = vld [vmem:[#allocation9 + $0x8] sm:$0xff]  ;;  %v1319_v3 = vld [vmem:[#allocation9] sm:$0xff]  ;;  %v1460_v10 = vld [vmem:[%s2057_s4] ss:$0 sm:$0xff] }
 0x2ce   : > { %959 = vmatpush.bf16.msra.mxu0 %v1325_v60 }
 0x2cf   : > { %v888_v5 = vld [vmem:[#allocation2] sm:$0xff] }
 0x2d0   : > { %v889_v7 = vpack.c.bf16 %v888_v5, %v888_v5 }
 0x2d2   : > { %960 = vmatpush.bf16.msra.mxu0 %v1324_v61 }
 0x2d6   : > { %961 = vmatpush.bf16.msra.mxu0 %v1323_v62 }
 0x2da   : > { %962 = vmatpush.bf16.msra.mxu0 %v1322_v0 }
 0x2de   : > { %963 = vmatpush.bf16.msra.mxu0 %v1321_v1 }
 0x2e2   : > { %964 = vmatpush.bf16.msra.mxu0 %v1320_v2 }
 0x2e6   : > { %965 = vmatpush.bf16.msra.mxu0 %v1319_v3 }
 0x2e9   : > { %966 = vmatmul.bf16.vlgmr.msra.gmra.mxu0 %v889_v7 }
 0x366   : > { %v967_v4 = vpop.f32.mrf.mxu0 }
 0x367   : > { %v968_v8 = vadd.f32 %v1460_v10, %v967_v4 }
 0x369   : > { %971 = vmax.xlane.f32.xlu0 %v968_v8 }
 0x36e   : > { %v969_v9 = vpop.f32.mrf.mxu0 }
 0x3dc   : > { %v972_v13 = vpop.xlane.xlu0 %971 }
 0x3dd   : > { %v973_v17 = vsub.f32 %v968_v8, %v972_v13 }
 0x3df   : > { %v974_v18 = vmul.f32 1.442695, %v973_v17 }
 0x3e1   : > { %1461 = vpow2.f32 %v974_v18 }
 0x3e7   : > { %v1462_v22 = vpop.eup %1461 }
 0x3e8   : > { %976 = vadd.xlane.f32.xlu0 %v1462_v22 }
 0x45b   : > { %v977_v26 = vpop.xlane.xlu0 %976 }
 0x45c   : > { %1463 = vlog2.f32 %v977_v26 }
 0x462   : > { %v1464_v30 = vpop.eup %1463 }
 0x463   : > { %v979_v34 = vmul.f32 0.6931472, %v1464_v30 }
 0x465   : > { %v980_v35 = vadd.f32 %v979_v34, %v972_v13 }
 0x467   : > { %v981_v39 = vsub.f32 %v968_v8, %v980_v35 }
 0x469   : > { %982 = vst [vmem:[#allocation10] sm:$0xff] %v981_v39 }
 0x46a PF: > { %s2064_s10 = sadd.s32 4294967295, %s1641_s23   ;;  %s993_s13 = sshll.u32 %s2058_s5, 4  ;;  %s994_s13 = int_to_ptr.hbm [resolvable:$true] %s993_s13 }
 0x46b   : > { %p1357_p3 = scmp.eq.s32.totalorder %s2064_s10, 1  ;;  %s1653_s14 = smov [#allocation10]  }
 0x46c   : > { %s991_s15 = sshll.u32 %s1653_s14, 4  ;;  %s992_s15 = int_to_ptr.vmem [resolvable:$true] %s991_s15 }
 0x46d   : > { %1338 = dma.vmem_to_hbm [thread:$0]  (%p1357_p3), %s992_s15, 128, %s994_s13, [#allocation6]  }
 0x46e   : > { %1616 = dma.done.wait (%p1357_p3), [#allocation6], 128  }
 0x46f   : > { %1618 = vsyncadd (%p1357_p3), [#allocation6], 4294967168 }
 0x470 PF: > { %s20_s23 = sadd.s32 1, %s1641_s23   ;;  %s2065_s18 = smov %s1625_s19 }
 0x471   : > { %p17_p4 = scmp.ge.s32.totalorder %s20_s23, 4   ;;  %s2066_s19 = smov %s1629_s20 }
 0x472   : > { %s2067_s20 = smov %s1759_s8  ;;  %s2068_s21 = smov %s1637_s22 }
 0x473   : > { %s2069_s22 = smov %s2071_s17  ;;  %19 = sbr.rel (!%p17_p4) target bundleno = 6 (0x6), region = 100 }
 0x478   :  { %1007 = vsyncpa [#allocation5], 1 }
 0x479   :  { %1009 = vsyncpa [#allocation5 + $0x1], 1 }
 0x47a   :  { %1010 = vsyncpa [#allocation8], 1 }
 0x47b   :  { %1011 = vsyncpa [#allocation6], 1 }
 0x47c   :  { %1013 = vsyncpa [#allocation6 + $0x1], 1 }

</bundles_post_ra>
